<compile_context>
chip_gen: v7x
topology: tpu7x:2x2x1
jax: 0.10.0
libtpu: 0.0.40
codegen_flags: <defaults>
</compile_context>

<pallas_src>
import functools

import jax
import jax.numpy as jnp
import numpy as np
from jax.experimental import pallas as pl
from jax.experimental.pallas import tpu as pltpu

BATCH_MAX_LENGTH = 25           # as in the PyTorch module -> num_steps = 26
NEG_INF = -1.0e30               # logit value for padded (non-existent) classes


def _round_up(x, m):
    return ((x + m - 1) // m) * m


def _prepare_weights(params, Cp):
    """Pad the class dim to Cp lanes and cast MXU operands to bf16.

    Used by both the Pallas wrapper and the pure-JAX reference so they consume
    identical weight values.
    """
    bf = jnp.bfloat16
    H = params["h2h_w"].shape[0]
    C = params["gen_b"].shape[1]
    pad_c = Cp - C
    gen_w_p = jnp.pad(params["gen_w"], ((0, 0), (0, pad_c)))
    gen_b_p = jnp.pad(params["gen_b"], ((0, 0), (0, pad_c)),
                      constant_values=NEG_INF)
    w_ih_e_p = jnp.pad(params["w_ih_e"], ((0, pad_c), (0, 0)))
    return {
        "i2h_w": params["i2h_w"].astype(bf),        # [D, H]   (used in wrapper only)
        "h2h_w": params["h2h_w"].astype(bf),        # [H, H]
        "h2h_b": params["h2h_b"],                   # [1, H]   f32
        "score_row": params["score_w"].reshape(1, H),  # [1, H] f32 (VPU path)
        "w_ih_x": params["w_ih_x"].astype(bf),      # [D, 4H]
        "w_ih_e": w_ih_e_p.astype(bf),              # [Cp, 4H]
        "w_hh": params["w_hh"].astype(bf),          # [H, 4H]
        "lstm_b": params["lstm_b"],                 # [1, 4H]  f32
        "gen_w": gen_w_p.astype(bf),                # [H, Cp]
        "gen_b": gen_b_p,                           # [1, Cp]  f32
    }


# -----------------------------------------------------------------------------
# Kernel: grid = (batch_blocks, num_steps); one inner grid step == one decode
# step for one batch block.  State scratch is re-initialized at step == 0 of
# every batch block, so batch blocks are fully independent ("parallel").
# -----------------------------------------------------------------------------
def _attention_decode_kernel(
    bh_proj_ref,   # [TB, T, H]  f32   hoisted encoder projection (loop-invariant)
    batch_H_ref,   # [TB, T, D]  f32   encoder features (loop-invariant)
    h2h_w_ref,     # [H, H]      bf16
    h2h_b_ref,     # [1, H]      f32
    score_w_ref,   # [1, H]      f32
    w_ih_x_ref,    # [D, 4H]     bf16  (LSTM input weights, context part)
    w_ih_e_ref,    # [Cp, 4H]    bf16  (LSTM input weights, one-hot part)
    w_hh_ref,      # [H, 4H]     bf16
    lstm_b_ref,    # [1, 4H]     f32   (bias_ih + bias_hh)
    gen_w_ref,     # [H, Cp]     bf16
    gen_b_ref,     # [1, Cp]     f32   (padded classes = -1e30)
    probs_ref,     # out block [1, TB, Cp]  f32 (step-major, lane-dense)
    h_sc,          # scratch [TB, H]  f32
    c_sc,          # scratch [TB, H]  f32
    onehot_sc,     # scratch [TB, Cp] f32  one-hot of previous predicted char
):
    step = pl.program_id(1)
    TB, T, H = bh_proj_ref.shape
    Cp = onehot_sc.shape[1]
    f32, bf16 = jnp.float32, jnp.bfloat16

    # ---- init decoder state at step 0 ([GO] token = class 0, zero hidden) ----
    @pl.when(step == 0)
    def _():
        h_sc[...] = jnp.zeros_like(h_sc)
        c_sc[...] = jnp.zeros_like(c_sc)
        col0 = jax.lax.broadcasted_iota(jnp.int32, (TB, Cp), 1)
        onehot_sc[...] = (col0 == 0).astype(f32)

    h = h_sc[...]
    c = c_sc[...]
    onehot = onehot_sc[...]
    h_bf = h.astype(bf16)

    # ---- attention scores: e = score(tanh(i2h(H) + h2h(h_prev))) ----
    # i2h(H) is the hoisted bh_proj (computed once outside the loop).
    h_proj = (jnp.dot(h_bf, h2h_w_ref[...], preferred_element_type=f32)
              + h2h_b_ref[...])                                    # [TB, H]
    e_in = jnp.tanh(bh_proj_ref[...] + h_proj[:, None, :])         # [TB, T, H]
    # N=1 score projection done on VPU + lane reduction (no MXU, no relayout).
    e = jnp.sum(e_in * score_w_ref[...].reshape(1, 1, H), axis=-1)  # [TB, T]

    # ---- softmax over encoder steps, attention context ----
    e_max = jnp.max(e, axis=1, keepdims=True)
    p = jnp.exp(e - e_max)
    alpha = p / jnp.sum(p, axis=1, keepdims=True)                  # [TB, T]
    context = jnp.sum(alpha[:, :, None] * batch_H_ref[...], axis=1)  # [TB, D]

    # ---- LSTMCell([context, onehot], (h, c)); PyTorch gate order i,f,g,o ----
    gates = (jnp.dot(context.astype(bf16), w_ih_x_ref[...], preferred_element_type=f32)
             + jnp.dot(onehot.astype(bf16), w_ih_e_ref[...], preferred_element_type=f32)
             + jnp.dot(h_bf, w_hh_ref[...], preferred_element_type=f32)
             + lstm_b_ref[...])                                    # [TB, 4H] f32
    i_g = jax.nn.sigmoid(gates[:, 0:H])
    f_g = jax.nn.sigmoid(gates[:, H:2 * H])
    g_g = jnp.tanh(gates[:, 2 * H:3 * H])
    o_g = jax.nn.sigmoid(gates[:, 3 * H:4 * H])
    c_new = f_g * c + i_g * g_g
    h_new = o_g * jnp.tanh(c_new)

    # ---- generator linear -> logits for this step (lane-dense store) ----
    logits = (jnp.dot(h_new.astype(bf16), gen_w_ref[...], preferred_element_type=f32)
              + gen_b_ref[...])                                    # [TB, Cp]
    probs_ref[0, :, :] = logits

    # ---- greedy feedback: next input = argmax (first max, like torch) ----
    max_v = jnp.max(logits, axis=1, keepdims=True)
    col = jax.lax.broadcasted_iota(jnp.int32, (TB, Cp), 1)
    idx = jnp.min(jnp.where(logits == max_v, col, Cp), axis=1, keepdims=True)
    onehot_sc[...] = (col == idx).astype(f32)
    h_sc[...] = h_new
    c_sc[...] = c_new


# -----------------------------------------------------------------------------
# Wrapper
# -----------------------------------------------------------------------------
def attention_forward(batch_H, params, num_steps=BATCH_MAX_LENGTH + 1,
                      batch_block=None):
    """Greedy attention decoding. batch_H: [B, T, D] -> probs [B, num_steps, C]."""
    B, T, D = batch_H.shape
    H = params["h2h_w"].shape[0]
    C = params["gen_b"].shape[1]
    Cp = _round_up(C, 128)                 # lane-dense padded class dim
    TB = B if batch_block is None else batch_block
    assert B % TB == 0, "batch_block must divide B"
    n_bblk = B // TB

    w = _prepare_weights(params, Cp)

    # Hoisted, loop-invariant encoder projection: ONE bf16 MXU matmul in XLA.
    bh_proj = jnp.dot(batch_H.astype(jnp.bfloat16), w["i2h_w"],
                      preferred_element_type=jnp.float32)          # [B, T, H] f32

    weights = (w["h2h_w"], w["h2h_b"], w["score_row"], w["w_ih_x"], w["w_ih_e"],
               w["w_hh"], w["lstm_b"], w["gen_w"], w["gen_b"])

    # Loop-invariant full blocks (constant index_map -> no per-step re-DMA).
    const_spec = lambda a: pl.BlockSpec(a.shape, lambda b, s, _n=a.ndim: (0,) * _n)

    probs_sm = pl.pallas_call(
        _attention_decode_kernel,
        out_shape=jax.ShapeDtypeStruct((num_steps, B, Cp), jnp.float32),
        grid_spec=pltpu.PrefetchScalarGridSpec(
            num_scalar_prefetch=0,
            grid=(n_bblk, num_steps),
            in_specs=[pl.BlockSpec((TB, T, H), lambda b, s: (b, 0, 0)),   # bh_proj
                      pl.BlockSpec((TB, T, D), lambda b, s: (b, 0, 0))]   # batch_H
                     + [const_spec(x) for x in weights],
            out_specs=pl.BlockSpec((1, TB, Cp), lambda b, s: (s, b, 0)),
            scratch_shapes=[
                pltpu.VMEM((TB, H), jnp.float32),    # h
                pltpu.VMEM((TB, H), jnp.float32),    # c
                pltpu.VMEM((TB, Cp), jnp.float32),   # one-hot of previous char
            ],
        ),
        compiler_params=pltpu.CompilerParams(
            # batch blocks are independent (megacore on v7x); decode steps are
            # a sequential recurrence.  At production sizes also consider
            # vmem_limit_bytes / pl.Buffered(1) on the loop-invariant inputs.
            dimension_semantics=("parallel", "arbitrary"),
        ),
    )(bh_proj, batch_H, *weights)

    # step-major [num_steps, B, Cp] -> [B, num_steps, C] (matches PyTorch output)
    return jnp.transpose(probs_sm, (1, 0, 2))[:, :, :C]


# -----------------------------------------------------------------------------
# Parameter construction (deterministic, PyTorch-style uniform init)
# -----------------------------------------------------------------------------
def make_params(key, input_size, hidden_size, num_classes):
    D, H, C = input_size, hidden_size, num_classes
    ks = jax.random.split(key, 12)
    u = lambda k, shape, fan: jax.random.uniform(
        k, shape, jnp.float32, -1.0, 1.0) / jnp.sqrt(float(fan))
    return {
        # AttentionCell
        "i2h_w":   u(ks[0], (D, H), D),          # Linear(D, H, bias=False).weight.T
        "h2h_w":   u(ks[1], (H, H), H),          # Linear(H, H).weight.T
        "h2h_b":   u(ks[2], (1, H), H),
        "score_w": u(ks[3], (H, 1), H),          # Linear(H, 1, bias=False).weight.T
        # LSTMCell(D + C, H): weight_ih split into context / one-hot parts
        "w_ih_x":  u(ks[4], (D, 4 * H), H),
        "w_ih_e":  u(ks[5], (C, 4 * H), H),
        "w_hh":    u(ks[6], (H, 4 * H), H),
        "lstm_b":  u(ks[7], (1, 4 * H), H) + u(ks[8], (1, 4 * H), H),  # b_ih + b_hh
        # generator Linear(H, C)
        "gen_w":   u(ks[9], (H, C), H),
        "gen_b":   u(ks[10], (1, C), H),
    }


# -----------------------------------------------------------------------------
# Pure-JAX reference (mirrors the PyTorch inference loop, with the same bf16
# matmul operands / class padding as the kernel) for verification
# -----------------------------------------------------------------------------
def reference_forward(batch_H, params, num_steps=BATCH_MAX_LENGTH + 1):
    B, T, D = batch_H.shape
    H = params["h2h_w"].shape[0]
    C = params["gen_b"].shape[1]
    Cp = _round_up(C, 128)
    w = _prepare_weights(params, Cp)
    f32, bf = jnp.float32, jnp.bfloat16

    bh_proj = jnp.dot(batch_H.astype(bf), w["i2h_w"], preferred_element_type=f32)
    h = jnp.zeros((B, H), f32)
    c = jnp.zeros((B, H), f32)
    onehot = jax.nn.one_hot(jnp.zeros((B,), jnp.int32), Cp, dtype=f32)
    outs = []
    for _ in range(num_steps):
        h_proj = jnp.dot(h.astype(bf), w["h2h_w"], preferred_element_type=f32) + w["h2h_b"]
        e_in = jnp.tanh(bh_proj + h_proj[:, None, :])
        e = jnp.sum(e_in * w["score_row"].reshape(1, 1, H), axis=-1)
        e_max = jnp.max(e, axis=1, keepdims=True)
        p = jnp.exp(e - e_max)
        alpha = p / jnp.sum(p, axis=1, keepdims=True)
        context = jnp.sum(alpha[:, :, None] * batch_H, axis=1)
        gates = (jnp.dot(context.astype(bf), w["w_ih_x"], preferred_element_type=f32)
                 + jnp.dot(onehot.astype(bf), w["w_ih_e"], preferred_element_type=f32)
                 + jnp.dot(h.astype(bf), w["w_hh"], preferred_element_type=f32)
                 + w["lstm_b"])
        i_g = jax.nn.sigmoid(gates[:, :H])
        f_g = jax.nn.sigmoid(gates[:, H:2 * H])
        g_g = jnp.tanh(gates[:, 2 * H:3 * H])
        o_g = jax.nn.sigmoid(gates[:, 3 * H:])
        c = f_g * c + i_g * g_g
        h = o_g * jnp.tanh(c)
        logits = jnp.dot(h.astype(bf), w["gen_w"], preferred_element_type=f32) + w["gen_b"]
        outs.append(logits[:, :C])
        onehot = jax.nn.one_hot(jnp.argmax(logits, axis=1), Cp, dtype=f32)
    return jnp.stack(outs, axis=1)


if __name__ == "__main__":
    # Small shapes (original module uses HIDDEN_SIZE=256; scaled down for test).
    # Note: for real workloads B should be >= 8 (sublane) and ideally 128/256-
    # aligned to fill the MXU M dimension.
    B, T, D, H = 2, 8, 32, 32
    characters = list("0123456789")          # ['[GO]', '[s]'] + chars -> C classes
    C = len(characters) + 2

    key = jax.random.PRNGKey(0)
    k_x, k_p = jax.random.split(key)
    batch_H = jax.random.normal(k_x, (B, T, D), jnp.float32)   # layout: [B, T, D]
    params = make_params(k_p, D, H, C)

    num_steps = BATCH_MAX_LENGTH + 1
    fwd = jax.jit(functools.partial(attention_forward, num_steps=num_steps))
    probs = jax.block_until_ready(fwd(batch_H, params))

    assert probs.shape == (B, num_steps, C)
    ref = reference_forward(batch_H, params, num_steps)
    np.testing.assert_allclose(np.asarray(probs), np.asarray(ref),
                               atol=1e-2, rtol=1e-2)
    print("KERNEL_OK")
</pallas_src>

<mosaic_0001>
module attributes {stable_mosaic.version = 11 : i64} {
  func.func @_attention_decode_kernel(%arg0: i32, %arg1: i32, %arg2: memref<2x8x32xf32, #tpu.memory_space<vmem>>, %arg3: memref<2x8x32xf32, #tpu.memory_space<vmem>>, %arg4: memref<32x32xbf16, #tpu.memory_space<vmem>>, %arg5: memref<1x32xf32, #tpu.memory_space<vmem>>, %arg6: memref<1x32xf32, #tpu.memory_space<vmem>>, %arg7: memref<32x128xbf16, #tpu.memory_space<vmem>>, %arg8: memref<128x128xbf16, #tpu.memory_space<vmem>>, %arg9: memref<32x128xbf16, #tpu.memory_space<vmem>>, %arg10: memref<1x128xf32, #tpu.memory_space<vmem>>, %arg11: memref<32x128xbf16, #tpu.memory_space<vmem>>, %arg12: memref<1x128xf32, #tpu.memory_space<vmem>>, %arg13: memref<1x2x128xf32, #tpu.memory_space<vmem>>, %arg14: memref<2x32xf32, #tpu.memory_space<vmem>>, %arg15: memref<2x32xf32, #tpu.memory_space<vmem>>, %arg16: memref<2x128xf32, #tpu.memory_space<vmem>>) attributes {dimension_semantics = [#tpu.dimension_semantics<parallel>, #tpu.dimension_semantics<arbitrary>], iteration_bounds = array<i64: 1, 26>, scalar_prefetch = 0 : i64, scratch_operands = 3 : i64, tpu.core_type = #tpu.core_type<tc>, window_params = [{transform_indices = @transform_0, window_bounds = array<i64: 2, 8, 32>}, {transform_indices = @transform_1, window_bounds = array<i64: 2, 8, 32>}, {pipeline_mode = #tpu.pipeline_mode<synchronous>, transform_indices = @transform_2, window_bounds = array<i64: 32, 32>}, {pipeline_mode = #tpu.pipeline_mode<synchronous>, transform_indices = @transform_3, window_bounds = array<i64: 1, 32>}, {pipeline_mode = #tpu.pipeline_mode<synchronous>, transform_indices = @transform_4, window_bounds = array<i64: 1, 32>}, {pipeline_mode = #tpu.pipeline_mode<synchronous>, transform_indices = @transform_5, window_bounds = array<i64: 32, 128>}, {pipeline_mode = #tpu.pipeline_mode<synchronous>, transform_indices = @transform_6, window_bounds = array<i64: 128, 128>}, {pipeline_mode = #tpu.pipeline_mode<synchronous>, transform_indices = @transform_7, window_bounds = array<i64: 32, 128>}, {pipeline_mode = #tpu.pipeline_mode<synchronous>, transform_indices = @transform_8, window_bounds = array<i64: 1, 128>}, {pipeline_mode = #tpu.pipeline_mode<synchronous>, transform_indices = @transform_9, window_bounds = array<i64: 32, 128>}, {pipeline_mode = #tpu.pipeline_mode<synchronous>, transform_indices = @transform_10, window_bounds = array<i64: 1, 128>}, {transform_indices = @transform_11, window_bounds = array<i64: 1, 2, 128>}]} {
    %c0_i32 = arith.constant 0 : i32
    %0 = arith.cmpi eq, %arg1, %c0_i32 : i32
    %1 = arith.extui %0 : i1 to i32
    %c0_i32_0 = arith.constant 0 : i32
    %2 = arith.cmpi ne, %1, %c0_i32_0 : i32
    scf.if %2 {
      %cst_52 = arith.constant 0.000000e+00 : f32
      %99 = vector.broadcast %cst_52 : f32 to vector<2x32xf32>
      %c0_53 = arith.constant 0 : index
      %c0_54 = arith.constant 0 : index
      %100 = vector.load %arg14[%c0_53, %c0_54] : memref<2x32xf32, #tpu.memory_space<vmem>>, vector<2x32xf32>
      tpu.vector_store %arg14[%c0_53, %c0_54], %99 {strides = array<i32>} : memref<2x32xf32, #tpu.memory_space<vmem>>, vector<2x32xf32>,
      %cst_55 = arith.constant 0.000000e+00 : f32
      %101 = vector.broadcast %cst_55 : f32 to vector<2x32xf32>
      %c0_56 = arith.constant 0 : index
      %c0_57 = arith.constant 0 : index
      %102 = vector.load %arg15[%c0_56, %c0_57] : memref<2x32xf32, #tpu.memory_space<vmem>>, vector<2x32xf32>
      tpu.vector_store %arg15[%c0_56, %c0_57], %101 {strides = array<i32>} : memref<2x32xf32, #tpu.memory_space<vmem>>, vector<2x32xf32>,
      %103 = tpu.iota {dimensions = array<i32: 1>} : vector<2x128xi32>
      %c0_i32_58 = arith.constant 0 : i32
      %104 = vector.broadcast %c0_i32_58 : i32 to vector<2x128xi32>
      %105 = arith.cmpi eq, %103, %104 : vector<2x128xi32>
      %106 = arith.extui %105 : vector<2x128xi1> to vector<2x128xi32>
      %107 = arith.sitofp %106 : vector<2x128xi32> to vector<2x128xf32>
      %c0_59 = arith.constant 0 : index
      %c0_60 = arith.constant 0 : index
      %108 = vector.load %arg16[%c0_59, %c0_60] : memref<2x128xf32, #tpu.memory_space<vmem>>, vector<2x128xf32>
      tpu.vector_store %arg16[%c0_59, %c0_60], %107 {strides = array<i32>} : memref<2x128xf32, #tpu.memory_space<vmem>>, vector<2x128xf32>,
    } else {
    }
    %c0 = arith.constant 0 : index
    %c0_1 = arith.constant 0 : index
    %3 = vector.load %arg14[%c0, %c0_1] : memref<2x32xf32, #tpu.memory_space<vmem>>, vector<2x32xf32>
    %c0_2 = arith.constant 0 : index
    %c0_3 = arith.constant 0 : index
    %4 = vector.load %arg15[%c0_2, %c0_3] : memref<2x32xf32, #tpu.memory_space<vmem>>, vector<2x32xf32>
    %c0_4 = arith.constant 0 : index
    %c0_5 = arith.constant 0 : index
    %5 = vector.load %arg16[%c0_4, %c0_5] : memref<2x128xf32, #tpu.memory_space<vmem>>, vector<2x128xf32>
    %6 = arith.truncf %3 : vector<2x32xf32> to vector<2x32xbf16>
    %c0_6 = arith.constant 0 : index
    %c0_7 = arith.constant 0 : index
    %7 = vector.load %arg4[%c0_6, %c0_7] : memref<32x32xbf16, #tpu.memory_space<vmem>>, vector<32x32xbf16>
    %cst = arith.constant dense<0.000000e+00> : vector<2x32xf32>
    %8 = tpu.matmul %6, %7, %cst {dimension_numbers = #tpu.dot_dimension_numbers<[1], [0], [0], [1], [0, 0, 1, 1], [], []>} : vector<2x32xbf16>, vector<32x32xbf16>, vector<2x32xf32> -> vector<2x32xf32>
    %c0_8 = arith.constant 0 : index
    %c0_9 = arith.constant 0 : index
    %9 = vector.load %arg5[%c0_8, %c0_9] : memref<1x32xf32, #tpu.memory_space<vmem>>, vector<1x32xf32>
    %10 = vector.broadcast %9 : vector<1x32xf32> to vector<2x32xf32>
    %11 = arith.addf %8, %10 : vector<2x32xf32>
    %c0_10 = arith.constant 0 : index
    %c0_11 = arith.constant 0 : index
    %c0_12 = arith.constant 0 : index
    %12 = vector.load %arg2[%c0_10, %c0_11, %c0_12] : memref<2x8x32xf32, #tpu.memory_space<vmem>>, vector<2x8x32xf32>
    %13 = vector.shape_cast %11 : vector<2x32xf32> to vector<2x1x32xf32>
    %14 = vector.broadcast %13 : vector<2x1x32xf32> to vector<2x8x32xf32>
    %15 = arith.addf %12, %14 : vector<2x8x32xf32>
    %16 = math.tanh %15 : vector<2x8x32xf32>
    %c0_13 = arith.constant 0 : index
    %c0_14 = arith.constant 0 : index
    %17 = vector.load %arg6[%c0_13, %c0_14] : memref<1x32xf32, #tpu.memory_space<vmem>>, vector<1x32xf32>
    %18 = vector.shape_cast %17 : vector<1x32xf32> to vector<1x1x32xf32>
    %19 = vector.broadcast %18 : vector<1x1x32xf32> to vector<2x8x32xf32>
    %20 = arith.mulf %16, %19 : vector<2x8x32xf32>
    %cst_15 = arith.constant dense<0.000000e+00> : vector<2x8xf32>
    %21 = vector.multi_reduction <add>, %20, %cst_15 [2] : vector<2x8x32xf32> to vector<2x8xf32>
    %cst_16 = arith.constant dense<0xFF800000> : vector<2xf32>
    %22 = vector.multi_reduction <maximumf>, %21, %cst_16 [1] : vector<2x8xf32> to vector<2xf32>
    %23 = vector.shape_cast %22 : vector<2xf32> to vector<2x1xf32>
    %24 = vector.broadcast %23 : vector<2x1xf32> to vector<2x8xf32>
    %25 = arith.subf %21, %24 : vector<2x8xf32>
    %26 = math.exp %25 : vector<2x8xf32>
    %cst_17 = arith.constant dense<0.000000e+00> : vector<2xf32>
    %27 = vector.multi_reduction <add>, %26, %cst_17 [1] : vector<2x8xf32> to vector<2xf32>
    %28 = vector.shape_cast %27 : vector<2xf32> to vector<2x1xf32>
    %29 = vector.broadcast %28 : vector<2x1xf32> to vector<2x8xf32>
    %30 = arith.divf %26, %29 : vector<2x8xf32>
    %31 = vector.shape_cast %30 : vector<2x8xf32> to vector<2x8x1xf32>
    %c0_18 = arith.constant 0 : index
    %c0_19 = arith.constant 0 : index
    %c0_20 = arith.constant 0 : index
    %32 = vector.load %arg3[%c0_18, %c0_19, %c0_20] : memref<2x8x32xf32, #tpu.memory_space<vmem>>, vector<2x8x32xf32>
    %33 = vector.broadcast %31 : vector<2x8x1xf32> to vector<2x8x32xf32>
    %34 = arith.mulf %33, %32 : vector<2x8x32xf32>
    %cst_21 = arith.constant dense<0.000000e+00> : vector<2x32xf32>
    %35 = vector.multi_reduction <add>, %34, %cst_21 [1] : vector<2x8x32xf32> to vector<2x32xf32>
    %36 = arith.truncf %35 : vector<2x32xf32> to vector<2x32xbf16>
    %c0_22 = arith.constant 0 : index
    %c0_23 = arith.constant 0 : index
    %37 = vector.load %arg7[%c0_22, %c0_23] : memref<32x128xbf16, #tpu.memory_space<vmem>>, vector<32x128xbf16>
    %cst_24 = arith.constant dense<0.000000e+00> : vector<2x128xf32>
    %38 = tpu.matmul %36, %37, %cst_24 {dimension_numbers = #tpu.dot_dimension_numbers<[1], [0], [0], [1], [0, 0, 1, 1], [], []>} : vector<2x32xbf16>, vector<32x128xbf16>, vector<2x128xf32> -> vector<2x128xf32>
    %39 = arith.truncf %5 : vector<2x128xf32> to vector<2x128xbf16>
    %c0_25 = arith.constant 0 : index
    %c0_26 = arith.constant 0 : index
    %40 = vector.load %arg8[%c0_25, %c0_26] : memref<128x128xbf16, #tpu.memory_space<vmem>>, vector<128x128xbf16>
    %cst_27 = arith.constant dense<0.000000e+00> : vector<2x128xf32>
    %41 = tpu.matmul %39, %40, %cst_27 {dimension_numbers = #tpu.dot_dimension_numbers<[1], [0], [0], [1], [0, 0, 1, 1], [], []>} : vector<2x128xbf16>, vector<128x128xbf16>, vector<2x128xf32> -> vector<2x128xf32>
    %42 = arith.addf %38, %41 : vector<2x128xf32>
    %c0_28 = arith.constant 0 : index
    %c0_29 = arith.constant 0 : index
    %43 = vector.load %arg9[%c0_28, %c0_29] : memref<32x128xbf16, #tpu.memory_space<vmem>>, vector<32x128xbf16>
    %cst_30 = arith.constant dense<0.000000e+00> : vector<2x128xf32>
    %44 = tpu.matmul %6, %43, %cst_30 {dimension_numbers = #tpu.dot_dimension_numbers<[1], [0], [0], [1], [0, 0, 1, 1], [], []>} : vector<2x32xbf16>, vector<32x128xbf16>, vector<2x128xf32> -> vector<2x128xf32>
    %45 = arith.addf %42, %44 : vector<2x128xf32>
    %c0_31 = arith.constant 0 : index
    %c0_32 = arith.constant 0 : index
    %46 = vector.load %arg10[%c0_31, %c0_32] : memref<1x128xf32, #tpu.memory_space<vmem>>, vector<1x128xf32>
    %47 = vector.broadcast %46 : vector<1x128xf32> to vector<2x128xf32>
    %48 = arith.addf %45, %47 : vector<2x128xf32>
    %49 = vector.extract_strided_slice %48 {offsets = [0, 0], sizes = [2, 32], strides = [1, 1]} : vector<2x128xf32> to vector<2x32xf32>
    %50 = arith.negf %49 : vector<2x32xf32>
    %51 = math.exp %50 : vector<2x32xf32>
    %cst_33 = arith.constant 1.000000e+00 : f32
    %52 = vector.broadcast %cst_33 : f32 to vector<2x32xf32>
    %53 = arith.addf %52, %51 : vector<2x32xf32>
    %54 = arith.divf %52, %53 : vector<2x32xf32>
    %55 = vector.extract_strided_slice %48 {offsets = [0, 32], sizes = [2, 32], strides = [1, 1]} : vector<2x128xf32> to vector<2x32xf32>
    %56 = arith.negf %55 : vector<2x32xf32>
    %57 = math.exp %56 : vector<2x32xf32>
    %cst_34 = arith.constant 1.000000e+00 : f32
    %58 = vector.broadcast %cst_34 : f32 to vector<2x32xf32>
    %59 = arith.addf %58, %57 : vector<2x32xf32>
    %60 = arith.divf %58, %59 : vector<2x32xf32>
    %61 = vector.extract_strided_slice %48 {offsets = [0, 64], sizes = [2, 32], strides = [1, 1]} : vector<2x128xf32> to vector<2x32xf32>
    %62 = math.tanh %61 : vector<2x32xf32>
    %63 = vector.extract_strided_slice %48 {offsets = [0, 96], sizes = [2, 32], strides = [1, 1]} : vector<2x128xf32> to vector<2x32xf32>
    %64 = arith.negf %63 : vector<2x32xf32>
    %65 = math.exp %64 : vector<2x32xf32>
    %cst_35 = arith.constant 1.000000e+00 : f32
    %66 = vector.broadcast %cst_35 : f32 to vector<2x32xf32>
    %67 = arith.addf %66, %65 : vector<2x32xf32>
    %68 = arith.divf %66, %67 : vector<2x32xf32>
    %69 = arith.mulf %60, %4 : vector<2x32xf32>
    %70 = arith.mulf %54, %62 : vector<2x32xf32>
    %71 = arith.addf %69, %70 : vector<2x32xf32>
    %72 = math.tanh %71 : vector<2x32xf32>
    %73 = arith.mulf %68, %72 : vector<2x32xf32>
    %74 = arith.truncf %73 : vector<2x32xf32> to vector<2x32xbf16>
    %c0_36 = arith.constant 0 : index
    %c0_37 = arith.constant 0 : index
    %75 = vector.load %arg11[%c0_36, %c0_37] : memref<32x128xbf16, #tpu.memory_space<vmem>>, vector<32x128xbf16>
    %cst_38 = arith.constant dense<0.000000e+00> : vector<2x128xf32>
    %76 = tpu.matmul %74, %75, %cst_38 {dimension_numbers = #tpu.dot_dimension_numbers<[1], [0], [0], [1], [0, 0, 1, 1], [], []>} : vector<2x32xbf16>, vector<32x128xbf16>, vector<2x128xf32> -> vector<2x128xf32>
    %c0_39 = arith.constant 0 : index
    %c0_40 = arith.constant 0 : index
    %77 = vector.load %arg12[%c0_39, %c0_40] : memref<1x128xf32, #tpu.memory_space<vmem>>, vector<1x128xf32>
    %78 = vector.broadcast %77 : vector<1x128xf32> to vector<2x128xf32>
    %79 = arith.addf %76, %78 : vector<2x128xf32>
    %c0_41 = arith.constant 0 : index
    %c0_42 = arith.constant 0 : index
    %c0_43 = arith.constant 0 : index
    %80 = vector.load %arg13[%c0_41, %c0_42, %c0_43] : memref<1x2x128xf32, #tpu.memory_space<vmem>>, vector<1x2x128xf32>
    %81 = vector.shape_cast %80 : vector<1x2x128xf32> to vector<2x128xf32>
    %82 = vector.shape_cast %79 : vector<2x128xf32> to vector<1x2x128xf32>
    tpu.vector_store %arg13[%c0_41, %c0_42, %c0_43], %82 {strides = array<i32>} : memref<1x2x128xf32, #tpu.memory_space<vmem>>, vector<1x2x128xf32>,
    %cst_44 = arith.constant dense<0xFF800000> : vector<2xf32>
    %83 = vector.multi_reduction <maximumf>, %79, %cst_44 [1] : vector<2x128xf32> to vector<2xf32>
    %84 = vector.shape_cast %83 : vector<2xf32> to vector<2x1xf32>
    %85 = tpu.iota {dimensions = array<i32: 1>} : vector<2x128xi32>
    %86 = vector.broadcast %84 : vector<2x1xf32> to vector<2x128xf32>
    %87 = arith.cmpf oeq, %79, %86 : vector<2x128xf32>
    %c128_i32 = arith.constant 128 : i32
    %88 = vector.broadcast %c128_i32 : i32 to vector<2x128xi32>
    %89 = arith.select %87, %85, %88 : vector<2x128xi1>, vector<2x128xi32>
    %cst_45 = arith.constant dense<2147483647> : vector<2xi32>
    %90 = vector.multi_reduction <minsi>, %89, %cst_45 [1] : vector<2x128xi32> to vector<2xi32>
    %91 = vector.shape_cast %90 : vector<2xi32> to vector<2x1xi32>
    %92 = vector.broadcast %91 : vector<2x1xi32> to vector<2x128xi32>
    %93 = arith.cmpi eq, %85, %92 : vector<2x128xi32>
    %94 = arith.extui %93 : vector<2x128xi1> to vector<2x128xi32>
    %95 = arith.sitofp %94 : vector<2x128xi32> to vector<2x128xf32>
    %c0_46 = arith.constant 0 : index
    %c0_47 = arith.constant 0 : index
    %96 = vector.load %arg16[%c0_46, %c0_47] : memref<2x128xf32, #tpu.memory_space<vmem>>, vector<2x128xf32>
    tpu.vector_store %arg16[%c0_46, %c0_47], %95 {strides = array<i32>} : memref<2x128xf32, #tpu.memory_space<vmem>>, vector<2x128xf32>,
    %c0_48 = arith.constant 0 : index
    %c0_49 = arith.constant 0 : index
    %97 = vector.load %arg14[%c0_48, %c0_49] : memref<2x32xf32, #tpu.memory_space<vmem>>, vector<2x32xf32>
    tpu.vector_store %arg14[%c0_48, %c0_49], %73 {strides = array<i32>} : memref<2x32xf32, #tpu.memory_space<vmem>>, vector<2x32xf32>,
    %c0_50 = arith.constant 0 : index
    %c0_51 = arith.constant 0 : index
    %98 = vector.load %arg15[%c0_50, %c0_51] : memref<2x32xf32, #tpu.memory_space<vmem>>, vector<2x32xf32>
    tpu.vector_store %arg15[%c0_50, %c0_51], %71 {strides = array<i32>} : memref<2x32xf32, #tpu.memory_space<vmem>>, vector<2x32xf32>,
    return
  }
  func.func @transform_0(%arg0: i32, %arg1: i32) -> (i32, i32, i32) {
    %c0_i32 = arith.constant 0 : i32
    %c0_i32_0 = arith.constant 0 : i32
    %c0_i32_1 = arith.constant 0 : i32
    return %arg0, %c0_i32, %c0_i32_0 : i32, i32, i32
  }
  func.func @transform_1(%arg0: i32, %arg1: i32) -> (i32, i32, i32) {
    %c0_i32 = arith.constant 0 : i32
    %c0_i32_0 = arith.constant 0 : i32
    %c0_i32_1 = arith.constant 0 : i32
    return %arg0, %c0_i32, %c0_i32_0 : i32, i32, i32
  }
  func.func @transform_2(%arg0: i32, %arg1: i32) -> (i32, i32) {
    %c0_i32 = arith.constant 0 : i32
    %c0_i32_0 = arith.constant 0 : i32
    %c0_i32_1 = arith.constant 0 : i32
    return %c0_i32, %c0_i32_0 : i32, i32
  }
  func.func @transform_3(%arg0: i32, %arg1: i32) -> (i32, i32) {
    %c0_i32 = arith.constant 0 : i32
    %c0_i32_0 = arith.constant 0 : i32
    %c0_i32_1 = arith.constant 0 : i32
    return %c0_i32, %c0_i32_0 : i32, i32
  }
  func.func @transform_4(%arg0: i32, %arg1: i32) -> (i32, i32) {
    %c0_i32 = arith.constant 0 : i32
    %c0_i32_0 = arith.constant 0 : i32
    %c0_i32_1 = arith.constant 0 : i32
    return %c0_i32, %c0_i32_0 : i32, i32
  }
  func.func @transform_5(%arg0: i32, %arg1: i32) -> (i32, i32) {
    %c0_i32 = arith.constant 0 : i32
    %c0_i32_0 = arith.constant 0 : i32
    %c0_i32_1 = arith.constant 0 : i32
    return %c0_i32, %c0_i32_0 : i32, i32
  }
  func.func @transform_6(%arg0: i32, %arg1: i32) -> (i32, i32) {
    %c0_i32 = arith.constant 0 : i32
    %c0_i32_0 = arith.constant 0 : i32
    %c0_i32_1 = arith.constant 0 : i32
    return %c0_i32, %c0_i32_0 : i32, i32
  }
  func.func @transform_7(%arg0: i32, %arg1: i32) -> (i32, i32) {
    %c0_i32 = arith.constant 0 : i32
    %c0_i32_0 = arith.constant 0 : i32
    %c0_i32_1 = arith.constant 0 : i32
    return %c0_i32, %c0_i32_0 : i32, i32
  }
  func.func @transform_8(%arg0: i32, %arg1: i32) -> (i32, i32) {
    %c0_i32 = arith.constant 0 : i32
    %c0_i32_0 = arith.constant 0 : i32
    %c0_i32_1 = arith.constant 0 : i32
    return %c0_i32, %c0_i32_0 : i32, i32
  }
  func.func @transform_9(%arg0: i32, %arg1: i32) -> (i32, i32) {
    %c0_i32 = arith.constant 0 : i32
    %c0_i32_0 = arith.constant 0 : i32
    %c0_i32_1 = arith.constant 0 : i32
    return %c0_i32, %c0_i32_0 : i32, i32
  }
  func.func @transform_10(%arg0: i32, %arg1: i32) -> (i32, i32) {
    %c0_i32 = arith.constant 0 : i32
    %c0_i32_0 = arith.constant 0 : i32
    %c0_i32_1 = arith.constant 0 : i32
    return %c0_i32, %c0_i32_0 : i32, i32
  }
  func.func @transform_11(%arg0: i32, %arg1: i32) -> (i32, i32, i32) {
    %c0_i32 = arith.constant 0 : i32
    %c0_i32_0 = arith.constant 0 : i32
    return %arg1, %arg0, %c0_i32 : i32, i32, i32
  }
}

</mosaic_0001>

<bundles_post_ra>
// kernel: attention_forward.1
= control target key start
LH: loop header
LB: loop body
LE: loop exit
PB: predicated region body
PF: predicated region fallthrough
CT: control target
= control target key end

     0   :  { %s1402_s17 = smov 0   ;;  %s1404_s18 = smov 0   ;;  %s1574_s0 = inlined_call_operand.vmem [shape: f32[2,8,32], index: 0, kind: input, shape index: {}]   ;;  %s1575_s1 = inlined_call_operand.vmem [shape: f32[2,8,32], index: 1, kind: input, shape index: {}]   ;;  %s1576_s2 = inlined_call_operand.vmem [shape: bf16[32,32], index: 2, kind: input, shape index: {}]   ;;  %s1577_s3 = inlined_call_operand.vmem [shape: f32[1,32], index: 3, kind: input, shape index: {}]   ;;  %s1578_s4 = inlined_call_operand.vmem [shape: f32[1,32], index: 4, kind: input, shape index: {}]   ;;  %s1579_s5 = inlined_call_operand.vmem [shape: bf16[32,128], index: 5, kind: input, shape index: {}]   ;;  %s1580_s6 = inlined_call_operand.vmem [shape: bf16[128,128], index: 6, kind: input, shape index: {}]   ;;  %s1581_s7 = inlined_call_operand.vmem [shape: bf16[32,128], index: 7, kind: input, shape index: {}]   ;;  %s1582_s8 = inlined_call_operand.vmem [shape: f32[1,128], index: 8, kind: input, shape index: {}]   ;;  %s1583_s9 = inlined_call_operand.vmem [shape: bf16[32,128], index: 9, kind: input, shape index: {}]   ;;  %s1584_s10 = inlined_call_operand.vmem [shape: f32[1,128], index: 10, kind: input, shape index: {}]   ;;  %s1585_s11 = inlined_call_operand.vmem [shape: f32[26,2,128], index: 11, kind: output, shape index: {}]  }
   0x1   :  { %s1406_s19 = smov 0  }
   0x2 LB: > { %s30_s20 = sadd.s32 1, %s1328_s18  ;;  %p1135_p0 = scmp.ge.s32.totalorder %s1332_s19, 1  ;;  %s1332_s19 = sphi %s1406_s19, %s21_s19   ;;  %s1328_s18 = sphi %s1404_s18, %s1587_s18   ;;  %s1324_s17 = sphi %s1402_s17, %s1586_s17  }
   0x3   : > { %p31_p1 = scmp.ge.s32.totalorder %s30_s20, 26  ;;  %p363_p2 = scmp.lt.s32.totalorder %s1332_s19, 27 }
   0x5   : > { %s1589_s20 = smov (%p31_p1, %s30_s20), 0  ;;  %p364_p3 = pnand %p1135_p0, %p363_p2 }
   0x6   : > { %p422_p4 = scmp.lt.s32.totalorder (!%p364_p3), %s1324_s17, 25  ;;  %p1137_p5 = scmp.ne.s32.totalorder (!%p364_p3), %s1324_s17, 0 }
   0x7   : > { %367 = sbr.rel (%p364_p3) target bundleno = 2391 (0x957), region = 64 }
   0xe   : > { %s423_s21 = scalar_select %p422_p4, %s1324_s17, 25 }
   0xf   : > { %433 = sbr.rel (%p1137_p5) target bundleno = 22 (0x16), region = 68  ;;  %vm434_vm0 = vcmask (!%p1137_p5), 254976   ;;  %v437_v0 = vlaneseq (!%p1137_p5)  ;;  %v1334_v1 = vmov (!%p1137_p5), 0.0  }
  0x10   : > { %s1136_s22 = sshll.u32 %s423_s21, 1  ;;  %435 = vst.msk [vmem:[#allocation2] sm:$0x3] (!%p1137_p5), %vm434_vm0, %v1334_v1  ;;  %436 = vst.msk [vmem:[#allocation3] sm:$0x3] (!%p1137_p5), %vm434_vm0, %v1334_v1 }
  0x11   : > { %s1423_s25 = scalar_lea.vmem %s1585_s11, %s1136_s22  ;;  %v438_v2 = vand.u32 (!%p1137_p5), 127, %v437_v0 }
  0x13   : > { %vm439_vm1 = vcmp.eq.s32.totalorder (!%p1137_p5), %v438_v2, 0 }
  0x14   : > { %v1138_v3 = vsel (!%p1137_p5), %vm439_vm1, 1.0, %v1334_v1 }
  0x15   : > { %442 = vst [vmem:[#allocation4] sm:$0x3] (!%p1137_p5), %v1138_v3 }
  0x16 PF: > { %v1274_v4 = vld [vmem:[%s1576_s2] sm:$0xff]   ;;  %v1335_v5 = vmov 0.0   ;;  %v1275_v6 = vld [vmem:[%s1576_s2 + $0x8] sm:$0xff]   ;;  %vm1336_vm2 = vmmov 0   ;;  %vm470_vm3 = vcmask 261120   ;;  %v520_v11 = vlaneseq  ;;  %s1339_s28 = smov 32  }
  0x17   : > { %1188 = vmatprep.subr.bf16.mxu0 %v1335_v5  ;;  %1196 = vmatprep.subr.bf16.mxu1 %v1335_v5  ;;  %v443_v7 = vld [vmem:[#allocation2] sm:$0x3]  ;;  %v1337_v9 = vmov 1966171168   ;;  %v515_v28 = vld [vmem:[%s1574_s0 + $0x8] sm:$0xff]  ;;  %vm580_vm4 = vcmask 1041409  }
  0x18   : > { %1189 = vmatpush3.bf16.msra.mxu0 %v1274_v4  ;;  %1192 = vmatprep.mubr.msk.bf16.mxu0 %vm1336_vm2, %v1335_v5  ;;  %v1438_v8 = vpack.c.bf16 %v443_v7, %v443_v7  ;;  %v518_v10 = vunpack.c.l.s4 %v1337_v9  ;;  %v1445_v13 = vshrl.u32 %v520_v11, 7  ;;  %v1139_v14 = vld [vmem:[%s1577_s3] ss:$0 sm:$0xff]  ;;  %v1467_v39 = vand.u32 127, %v520_v11  ;;  %v1277_v1 = vld [vmem:[%s1580_s6 + $0x8] sm:$0xff]   ;;  %v1278_v11 = vld [vmem:[%s1580_s6 + $0x10] sm:$0xff]  }
  0x19   : > { %1190 = vmatprep.subr.bf16.mxu0 %v1335_v5  ;;  %1212 = vmatprep.mubr.msk.bf16.mxu1 %vm1336_vm2, %v1335_v5  ;;  %v514_v25 = vld [vmem:[%s1574_s0] sm:$0xff]  ;;  %vm583_vm5 = vcmask 58368   ;;  %v1338_v47 = vmov 0   ;;  %s1340_s23 = smov 64   ;;  %vm1004_vm6 = vcmask 1041408   ;;  %vm1033_vm8 = vcmask 254976  }
  0x1a   : > { %v519_v12 = vunpack.c.0.s8 %v518_v10  ;;  %v1452_v21 = vsub.s32 0, %v1445_v13  ;;  %v1143_v32 = vld [vmem:[%s1578_s4] ss:$0 sm:$0xff]  ;;  %v574_v41 = vsub.s32 %v1467_v39, %v1445_v13  ;;  %1273 = vset.pattern.permute.xlu0 %v1338_v47  ;;  %1272 = vset.pattern.permute.xlu1 %v1338_v47  ;;  %v594_v48 = vsub.s32 1, %v1445_v13 }
  0x1b   : > { %v1276_v0 = vld [vmem:[%s1580_s6] sm:$0xff]  }
  0x1c   : > { %1191 = vmatpush3.bf16.msra.mxu0 %v1275_v6  ;;  %v522_v15 = vsub.s32 %v519_v12, %v1445_v13  ;;  %1197 = vmatpush3.bf16.msra.mxu1 %v1276_v0  ;;  %v1279_v12 = vld [vmem:[%s1580_s6 + $0x18] sm:$0xff]   ;;  %v1280_v13 = vld [vmem:[%s1580_s6 + $0x20] sm:$0xff]  }
  0x1d   : > { %1216 = vmatprep.subr.bf16.mxu0 %v1335_v5  ;;  %1198 = vmatprep.subr.bf16.mxu1 %v1335_v5 }
  0x1f   : > { %1193 = vmatmul.mubr.msk.bf16.vlgmr.msra.gmra.mrb[0].mxu0 %vm470_vm3, %v1438_v8 }
  0x20   : > { %1220 = vmatprep.mubr.msk.bf16.mxu0 %vm1336_vm2, %v1335_v5  ;;  %1199 = vmatpush3.bf16.msra.mxu1 %v1277_v1 }
  0x21   : > { %1200 = vmatprep.subr.bf16.mxu1 %v1335_v5 }
  0x24   : > { %1201 = vmatpush3.bf16.msra.mxu1 %v1278_v11 }
  0x25   : > { %1202 = vmatprep.subr.bf16.mxu1 %v1335_v5 }
  0x28   : > { %1203 = vmatpush3.bf16.msra.mxu1 %v1279_v12 }
  0x29   : > { %1204 = vmatprep.subr.bf16.mxu1 %v1335_v5 }
  0x2c   : > { %1205 = vmatpush3.bf16.msra.mxu1 %v1280_v13 }
  0x2d   : > { %1206 = vmatprep.subr.bf16.mxu1 %v1335_v5 }
  0xf2   : > { %v508_v16 = vpop.f32.mrb[0].mxu0 }
  0xf3   : > { %v509_v17 = vadd.f32 %v1139_v14, %v508_v16  ;;  %v1194_v18 = vpop.f32.mrb[1].mxu0  ;;  %v1281_v14 = vld [vmem:[%s1580_s6 + $0x28] sm:$0xff]   ;;  %v1283_v16 = vld [vmem:[%s1580_s6 + $0x30] sm:$0xff]  }
  0xf4   : > { %v511_v19 = vpop.f32.mrb[2].mxu0  ;;  %1207 = vmatpush3.bf16.msra.mxu1 %v1281_v14  ;;  %v1285_v18 = vld [vmem:[%s1580_s6 + $0x38] sm:$0xff]  }
  0xf5   : > { %v523_v20 = vrot.slane %v509_v17, %v522_v15  ;;  %v1195_v22 = vpop.f32.mrb[3].mxu0  ;;  %1208 = vmatprep.subr.bf16.mxu1 %v1335_v5  ;;  %v1284_v17 = vld [vmem:[%s1579_s5 + $0x8] sm:$0xff]   ;;  %v445_v19 = vld [vmem:[#allocation4] sm:$0x3] }
  0xf6   : > { %v640_v22 = vld [vmem:[%s1575_s1] sm:$0xff] }
  0xf7   : > { %v524_v23 = vcombine.high %v523_v20, %v523_v20  ;;  %v531_v24 = vrot.slane %v523_v20, %v522_v15  ;;  %v674_v20 = vpack.c.bf16 %v445_v19, %v445_v19 }
  0xf8   : > { %1209 = vmatpush3.bf16.msra.mxu1 %v1283_v16  ;;  %v1289_v16 = vld [vmem:[%s1583_s9 + $0x8] sm:$0xff]  }
  0xf9   : > { %v538_v26 = vrot.slane %v524_v23, %v522_v15  ;;  %v542_v27 = vrot.slane %v531_v24, %v1452_v21  ;;  %v1282_v15 = vld [vmem:[%s1579_s5] sm:$0xff]   ;;  %1210 = vmatprep.subr.bf16.mxu1 %v1335_v5 }
  0xfa   : > { %1217 = vmatpush3.bf16.msra.mxu0 %v1282_v15  ;;  %v1288_v15 = vld [vmem:[%s1583_s9] sm:$0xff]  }
  0xfb   : > { %v546_v29 = vrot.slane %v538_v26, %v1452_v21  ;;  %v549_v30 = vadd.f32 %v542_v27, %v514_v25  ;;  %1218 = vmatprep.subr.bf16.mxu0 %v1335_v5  ;;  %v641_v25 = vld [vmem:[%s1575_s1 + $0x8] sm:$0xff] }
  0xfc   : > { %1211 = vmatpush3.bf16.msra.mxu1 %v1285_v18 }
  0xfd   : > { %v550_v31 = vadd.f32 %v546_v29, %v515_v28  ;;  %1290 = vtanh.f32 %v549_v30 }
  0xfe   : > { %1219 = vmatpush3.bf16.msra.mxu0 %v1284_v17 }
  0xff   : > { %1292 = vtanh.f32 %v550_v31  ;;  %1224 = vmatprep.subr.bf16.mxu0 %v1335_v5  ;;  %1213 = vmatmul.mubr.bf16.vlgmr.msra.gmra.mrb[0].mxu1 %v674_v20 }
 0x107   : > { %v1291_v33 = vpop.eup %1290 }
 0x108   : > { %v560_v34 = vmul.f32 %v1291_v33, %v1143_v32 }
 0x109   : > { %v1293_v35 = vpop.eup %1292 }
 0x10a   : > { %v562_v36 = vsel %vm470_vm3, %v560_v34, 0.0  ;;  %v561_v37 = vmul.f32 %v1293_v35, %v1143_v32 }
 0x10b   : > { %563 = vadd.xlane.f32.xlu0 %v562_v36 }
 0x10c   : > { %v565_v38 = vsel %vm470_vm3, %v561_v37, 0.0 }
 0x10f   : > { %566 = vadd.xlane.f32.xlu0 %v565_v38 }
 0x198   : > { %v564_v40 = vpop.xlane.xlu0 %563 }
 0x199   : > { %v575_v43 = vrot.slane %v564_v40, %v574_v41 }
 0x19c   : > { %v567_v42 = vpop.xlane.xlu0 %566 }
 0x19d   : > { %v579_v44 = vrot.slane %v567_v42, %v574_v41 }
 0x19f   : > { %v581_v45 = vsel %vm580_vm4, %v579_v44, %v575_v43 }
 0x1a0   : > { %v584_v46 = vsel %vm583_vm5, %v581_v45, -inf }
 0x1a1   : > { %585 = vmax.xlane.f32.xlu1 %v584_v46 }
 0x22e   : > { %v586_v49 = vpop.xlane.xlu1 %585 }
 0x22f   : > { %v591_v50 = vrot.slane %v586_v49, %v1452_v21  ;;  %v595_v51 = vrot.slane %v586_v49, %v594_v48 }
 0x231   : > { %v598_v52 = vsub.f32 %v564_v40, %v591_v50  ;;  %v599_v53 = vsub.f32 %v567_v42, %v595_v51  ;;  %v1287_v50 = vld [vmem:[%s1581_s7 + $0x8] sm:$0xff]   ;;  %v773_v51 = vpop.f32.mrb[0].mxu1 }
 0x233   : > { %v600_v54 = vmul.f32 1.442695, %v598_v52  ;;  %v602_v55 = vmul.f32 1.442695, %v599_v53  ;;  %v1214_v52 = vpop.f32.mrb[1].mxu1 }
 0x234   : > { %v776_v53 = vpop.f32.mrb[2].mxu1 }
 0x235   : > { %1294 = vpow2.f32 %v600_v54  ;;  %v1215_v54 = vpop.f32.mrb[3].mxu1 }
 0x236   : > { %1296 = vpow2.f32 %v602_v55 }
 0x23f   : > { %v1295_v56 = vpop.eup %1294 }
 0x240   : > { %v1297_v57 = vpop.eup %1296  ;;  %607 = vperm.xlu1 %1272, %v1295_v56  }
 0x241   : > { %610 = vperm.xlu0 %1273, %v1297_v57  }
 0x2bf   : > { %v608_v58 = vpop.permute.xlu1 %607 }
 0x2c0   : > { %v611_v59 = vpop.permute.xlu0 %610  ;;  %v615_v60 = vrot.slane %v608_v58, %v574_v41 }
 0x2c1   : > { %v619_v61 = vrot.slane %v611_v59, %v574_v41 }
 0x2c3   : > { %v620_v62 = vsel %vm580_vm4, %v619_v61, %v615_v60  ;;  %v1158_v61 = vld [vmem:[%s1582_s8] ss:$0 sm:$0xff] }
 0x2c4   : > { %v622_v63 = vsel %vm583_vm5, %v620_v62, 0.0 }
 0x2c5   : > { %623 = vadd.xlane.f32.xlu1 %v622_v63 }
 0x352   : > { %v624_v2 = vpop.xlane.xlu1 %623 }
 0x353   : > { %v629_v3 = vrot.slane %v624_v2, %v1452_v21  ;;  %v633_v4 = vrot.slane %v624_v2, %v594_v48  ;;  %v444_v21 = vld [vmem:[#allocation3] sm:$0x3] }
 0x354   : > { %v1286_v48 = vld [vmem:[%s1581_s7] sm:$0xff]  }
 0x355   : > { %1298 = vrcp.f32 %v629_v3 }
 0x356   : > { %1300 = vrcp.f32 %v633_v4 }
 0x35f   : > { %v1299_v6 = vpop.eup %1298 }
 0x360   : > { %v637_v7 = vmul.f32 %v1299_v6, %v1295_v56  ;;  %v1301_v9 = vpop.eup %1300 }
 0x361   : > { %v639_v10 = vmul.f32 %v1301_v9, %v1297_v57 }
 0x362   : > { %644 = vperm.xlu0 %1273, %v637_v7  }
 0x366   : > { %649 = vperm.xlu0 %1273, %v639_v10  }
 0x36a   : > { %913 = vrot.lane.b32.xlu0 %v444_v21, %s1339_s28 }
 0x3e1   : > { %v645_v23 = vpop.permute.xlu0 %644 }
 0x3e2   : > { %v652_v24 = vmul.f32 %v645_v23, %v640_v22  ;;  %v1160_v22 = vld [vmem:[%s1584_s10] ss:$0 sm:$0xff] }
 0x3e4   : > { %v654_v26 = vsel %vm470_vm3, %v652_v24, 0.0 }
 0x3e5   : > { %v655_v27 = vrot.slane %v654_v26, 4  ;;  %v650_v28 = vpop.permute.xlu0 %649 }
 0x3e6   : > { %v653_v29 = vmul.f32 %v650_v28, %v641_v25 }
 0x3e7   : > { %v656_v30 = vadd.f32 %v655_v27, %v654_v26 }
 0x3e8   : > { %v661_v31 = vsel %vm470_vm3, %v653_v29, 0.0 }
 0x3e9   : > { %v657_v32 = vrot.slane %v656_v30, 2  ;;  %v662_v33 = vrot.slane %v661_v31, 4  ;;  %v914_v11 = vpop.permute.xlu0 %913 }
 0x3eb   : > { %v658_v34 = vadd.f32 %v657_v32, %v656_v30  ;;  %v663_v35 = vadd.f32 %v662_v33, %v661_v31 }
 0x3ed   : > { %v659_v36 = vrot.slane %v658_v34, 1  ;;  %v664_v37 = vrot.slane %v663_v35, 2 }
 0x3ef   : > { %v660_v38 = vadd.f32 %v659_v36, %v658_v34  ;;  %v665_v40 = vadd.f32 %v664_v37, %v663_v35 }
 0x3f1   : > { %v666_v41 = vrot.slane %v665_v40, 1  ;;  %v668_v42 = vpack.c.bf16 %v660_v38, %v660_v38 }
 0x3f3   : > { %v667_v43 = vadd.f32 %v666_v41, %v665_v40  ;;  %v781_v45 = vunpack.c.l.b16 %v668_v42 }
 0x3f5   : > { %v669_v44 = vpack.c.bf16 %v667_v43, %v667_v43 }
 0x3f7   : > { %v782_v46 = vunpack.c.l.b16 %v669_v44 }
 0x3f9   : > { %v783_v47 = vsel %vm580_vm4, %v782_v46, %v781_v45 }
 0x3fa   : > { %v784_v49 = vpack.c.b16 %v783_v47, %v783_v47 }
 0x3fc   : > { %1221 = vmatmul.mubr.msk.bf16.vlgmr.msra.gmra.mrb[4].mxu0 %vm470_vm3, %v784_v49 }
 0x3fd   : > { %1225 = vmatpush3.bf16.msra.mxu0 %v1286_v48  ;;  %1228 = vmatprep.mubr.msk.bf16.mxu0 %vm1336_vm2, %v1335_v5 }
 0x3fe   : > { %1226 = vmatprep.subr.bf16.mxu0 %v1335_v5 }
 0x401   : > { %1227 = vmatpush3.bf16.msra.mxu0 %v1287_v50 }
 0x402   : > { %1232 = vmatprep.subr.bf16.mxu0 %v1335_v5 }
 0x404   : > { %1229 = vmatmul.mubr.msk.bf16.vlgmr.msra.gmra.mrb[8].mxu0 %vm470_vm3, %v1438_v8 }
 0x405   : > { %1236 = vmatprep.mubr.msk.bf16.mxu0 %vm1336_vm2, %v1335_v5  ;;  %1233 = vmatpush3.bf16.msra.mxu0 %v1288_v15 }
 0x406   : > { %1234 = vmatprep.subr.bf16.mxu0 %v1335_v5 }
 0x409   : > { %1235 = vmatpush3.bf16.msra.mxu0 %v1289_v16 }
 0x4cf   : > { %v834_v55 = vpop.f32.mrb[4].mxu0 }
 0x4d0   : > { %v835_v56 = vadd.f32 %v834_v55, %v773_v51  ;;  %v1222_v57 = vpop.f32.mrb[5].mxu0 }
 0x4d1   : > { %v837_v58 = vpop.f32.mrb[6].mxu0 }
 0x4d2   : > { %v1223_v59 = vpop.f32.mrb[7].mxu0 }
 0x4d7   : > { %v890_v60 = vpop.f32.mrb[8].mxu0 }
 0x4d8   : > { %v896_v62 = vadd.f32 %v890_v60, %v835_v56  ;;  %v1230_v63 = vpop.f32.mrb[9].mxu0 }
 0x4d9   : > { %v893_v8 = vpop.f32.mrb[10].mxu0 }
 0x4da   : > { %v904_v0 = vadd.f32 %v1158_v61, %v896_v62  ;;  %v1231_v1 = vpop.f32.mrb[11].mxu0 }
 0x4dc   : > { %1302 = vtanh.f32 %v904_v0  ;;  %v1159_v3 = vmul.f32 -1.442695, %v904_v0 }
 0x4de   : > { %1304 = vpow2.f32 %v1159_v3 }
 0x4e6   : > { %v1303_v2 = vpop.eup %1302 }
 0x4e7   : > { %918 = vrot.lane.b32.xlu1 %v1303_v2, %s1340_s23 }
 0x4e8   : > { %v1305_v4 = vpop.eup %1304 }
 0x4e9   : > { %v908_v6 = vadd.f32 1.0, %v1305_v4 }
 0x4eb   : > { %1306 = vrcp.f32 %v908_v6 }
 0x4f5   : > { %v1307_v7 = vpop.eup %1306 }
 0x4f6   : > { %v916_v12 = vmul.f32 %v1307_v7, %v914_v11 }
 0x559   : > { %v919_v9 = vpop.permute.xlu1 %918 }
 0x55a   : > { %v921_v10 = vmul.f32 %v1307_v7, %v919_v9 }
 0x55c   : > { %923 = vrot.lane.b32.xlu0 %v921_v10, %s1339_s28 }
 0x5ce   : > { %v924_v13 = vpop.permute.xlu0 %923 }
 0x5cf   : > { %v926_v14 = vadd.f32 %v924_v13, %v916_v12 }
 0x5d1   : > { %1308 = vtanh.f32 %v926_v14 }
 0x5db   : > { %v1309_v17 = vpop.eup %1308 }
 0x5dc   : > { %929 = vrot.lane.b32.xlu0 %v1309_v17, %s1340_s23 }
 0x64e   : > { %v930_v18 = vpop.permute.xlu0 %929 }
 0x64f   : > { %v932_v19 = vmul.f32 %v1307_v7, %v930_v18 }
 0x651   : > { %v933_v20 = vpack.c.bf16 %v932_v19, %v932_v19 }
 0x653   : > { %946 = vrot.lane.b32.xlu0 %v933_v20, %s1339_s28 }
 0x6c5   : > { %v947_v21 = vpop.permute.xlu0 %946 }
 0x6c6   : > { %1237 = vmatmul.mubr.msk.bf16.vlgmr.msra.gmra.mrb[12].mxu0 %vm470_vm3, %v947_v21 }
 0x799   : > { %v997_v23 = vpop.f32.mrb[12].mxu0 }
 0x79a   : > { %v998_v24 = vadd.f32 %v1160_v22, %v997_v23  ;;  %v1238_v25 = vpop.f32.mrb[13].mxu0 }
 0x79b   : > { %v1000_v26 = vpop.f32.mrb[14].mxu0 }
 0x79c   : > { %1003 = vst [vmem:[%s1423_s25] sm:$0x3] %v998_v24  ;;  %v1239_v27 = vpop.f32.mrb[15].mxu0  ;;  %v1005_v28 = vsel %vm1004_vm6, %v998_v24, -inf  ;;  %s1341_s25 = smov 96  }
 0x79d   : > { %1006 = vmax.xlane.f32.xlu1 %v1005_v28 }
 0x7ae   : > { %1030 = vrot.lane.b32.xlu1 %v932_v19, %s1339_s28 }
 0x82a   : > { %v1007_v29 = vpop.xlane.xlu1 %1006 }
 0x82b   : > { %vm1008_vm7 = vcmp.eq.f32.partialorder %v998_v24, %v1007_v29 }
 0x82c   : > { %v1009_v30 = vsel %vm1008_vm7, %v1467_v39, 128 }
 0x82d   : > { %v1010_v31 = vsel %vm1004_vm6, %v1009_v30, 2147483647 }
 0x82e   : > { %v1031_v32 = vpop.permute.xlu1 %1030  ;;  %v1012_v33 = vshra.s32 %v1010_v31, 16  ;;  %v1011_v35 = vand.u32 65535, %v1010_v31 }
 0x82f   : > { %1034 = vst.msk [vmem:[#allocation2] sm:$0x3] %vm1033_vm8, %v1031_v32 }
 0x830   : > { %v1014_v34 = vcvt.s32.f32 %v1012_v33  ;;  %v1013_v37 = vcvt.s32.f32 %v1011_v35 }
 0x832   : > { %1015 = vmin.xlane.f32.xlu0 %v1014_v34 }
 0x8bf   : > { %v1016_v36 = vpop.xlane.xlu0 %1015 }
 0x8c0   : > { %vm1017_vm9 = vcmp.eq.f32.partialorder %v1014_v34, %v1016_v36  ;;  %v1022_v40 = vcvt.f32.s32 %v1016_v36 }
 0x8c1   : > { %v1018_v38 = vsel %vm1017_vm9, %v1013_v37, inf }
 0x8c2   : > { %1019 = vmin.xlane.f32.xlu0 %v1018_v38  ;;  %v1023_v42 = vshll.u32 %v1022_v40, 16 }
 0x8d8   : > { %1036 = vrot.lane.b32.xlu0 %v926_v14, %s1341_s25 }
 0x94f   : > { %v1020_v41 = vpop.xlane.xlu0 %1019 }
 0x950   : > { %v1021_v43 = vcvt.f32.s32 %v1020_v41 }
 0x952   : > { %v1024_v44 = vadd.s32 %v1023_v42, %v1021_v43 }
 0x953   : > { %v1037_v45 = vpop.permute.xlu0 %1036 }
 0x954   : > { %vm1025_vm10 = vcmp.eq.s32.totalorder %v1467_v39, %v1024_v44  ;;  %1039 = vst.msk [vmem:[#allocation3] sm:$0x3] %vm1033_vm8, %v1037_v45 }
 0x955   : > { %v1164_v46 = vsel %vm1025_vm10, 1.0, %v1335_v5 }
 0x956   : > { %1028 = vst [vmem:[#allocation4] sm:$0x3] %v1164_v46 }
 0x957 PF: > { %s21_s19 = sadd.s32 1, %s1332_s19   ;;  %s1586_s17 = smov %s1328_s18 }
 0x958   : > { %p18_p6 = scmp.ge.s32.totalorder %s21_s19, 28   ;;  %s1587_s18 = smov %s1589_s20 }
 0x95a   :  { %20 = sbr.rel (!%p18_p6) target bundleno = 2 (0x2), region = 101 }

</bundles_post_ra>
